<compile_context>
chip_gen: v6e
topology: v6e:2x2x1
jax: 0.10.0
libtpu: 0.0.40
codegen_flags: <defaults>
</compile_context>

<pallas_src>
import math

import jax
import jax.numpy as jnp
from jax.experimental import pallas as pl
from jax.experimental.pallas import tpu as pltpu


def _round_up(x, m):
    return (x + m - 1) // m * m


# --------------------------- kernels ---------------------------------------

def _matmul_kernel_f32_out(x_ref, w_ref, o_ref):
    """Y += X @ W, accumulating directly into the f32, k-resident output tile."""

    @pl.when(pl.program_id(2) == 0)
    def _():
        o_ref[...] = jnp.zeros_like(o_ref)

    o_ref[...] += jnp.dot(x_ref[...], w_ref[...],
                          preferred_element_type=jnp.float32)


def _matmul_kernel_acc(x_ref, w_ref, o_ref, acc_ref):
    """Variant with a separate f32 accumulator for narrow output dtypes."""

    @pl.when(pl.program_id(2) == 0)
    def _():
        acc_ref[...] = jnp.zeros_like(acc_ref)

    acc_ref[...] += jnp.dot(x_ref[...], w_ref[...],
                            preferred_element_type=jnp.float32)

    @pl.when(pl.program_id(2) == pl.num_programs(2) - 1)
    def _():
        o_ref[...] = acc_ref[...].astype(o_ref.dtype)


# --------------------------- config ----------------------------------------

def _select_tile_config():
    """Generation-aware tile sizes + VMEM budget."""
    try:
        vmem_bytes = pltpu.get_tpu_info().vmem_capacity_bytes
    except Exception:
        vmem_bytes = 64 * 1024 * 1024  # be conservative: assume v7x (64 MiB/TC)

    if vmem_bytes >= 100 * 1024 * 1024:
        # v5e / v6e: 128 MiB physical VMEM -> big double-buffered bf16 tiles.
        return dict(tile_m=512, tile_n=1024, tile_k=2048,
                    vmem_limit_bytes=96 * 1024 * 1024)
    # v7x: 64 MiB per TensorCore -> keep the footprint well under the cap.
    return dict(tile_m=512, tile_n=512, tile_k=1024,
                vmem_limit_bytes=44 * 1024 * 1024)


# --------------------------- wrapper ----------------------------------------

def row_parallel_matmul(x2d, w_t_padded, *, n_out, tile_m, tile_n, tile_k,
                        vmem_limit_bytes, out_dtype=jnp.float32):
    """Y = x2d @ W^T using a pre-padded, pre-transposed bf16 weight.

    x2d:        (M, K) activations (any float dtype; cast to bf16 here).
    w_t_padded: (k_pad, n_pad) bf16 weight, zero-padded once at init so the
                K padding does not perturb the accumulation.
    """
    M, K = x2d.shape
    k_pad, n_pad = w_t_padded.shape
    assert k_pad % tile_k == 0 and n_pad % tile_n == 0
    assert k_pad >= K

    tm = min(tile_m, _round_up(M, 16))     # bf16 sublane granule = 16
    m_pad = _round_up(M, tm)

    x_bf = x2d.astype(jnp.bfloat16)
    if (m_pad, k_pad) != (M, K):
        # K padding MUST be zeros so the accumulation is unaffected.
        x_bf = jnp.pad(x_bf, ((0, m_pad - M), (0, k_pad - K)))

    grid = (m_pad // tm, n_pad // tile_n, k_pad // tile_k)

    cost = pl.CostEstimate(
        flops=2 * m_pad * n_pad * k_pad,
        transcendentals=0,
        bytes_accessed=(m_pad * k_pad * 2 + k_pad * n_pad * 2
                        + m_pad * n_pad * jnp.dtype(out_dtype).itemsize),
    )

    f32_out = jnp.dtype(out_dtype) == jnp.dtype(jnp.float32)
    kernel = _matmul_kernel_f32_out if f32_out else _matmul_kernel_acc
    scratch = () if f32_out else (pltpu.VMEM((tm, tile_n), jnp.float32),)

    out = pl.pallas_call(
        kernel,
        out_shape=jax.ShapeDtypeStruct((m_pad, n_pad), out_dtype),
        grid_spec=pltpu.PrefetchScalarGridSpec(
            num_scalar_prefetch=0,
            grid=grid,
            in_specs=[
                pl.BlockSpec((tm, tile_k), lambda i, j, k: (i, k)),
                pl.BlockSpec((tile_k, tile_n), lambda i, j, k: (k, j)),
            ],
            out_specs=pl.BlockSpec((tm, tile_n), lambda i, j, k: (i, j)),
            scratch_shapes=scratch,
        ),
        compiler_params=pltpu.CompilerParams(
            dimension_semantics=("parallel", "parallel", "arbitrary"),
            vmem_limit_bytes=vmem_limit_bytes,
        ),
        cost_estimate=cost,
    )(x_bf, w_t_padded)

    if (m_pad, n_pad) != (M, n_out):
        out = out[:M, :n_out]
    return out


# --------------------------- module -----------------------------------------

class RowParallelLinear:
    """JAX/Pallas port of RowParallelLinear with tensor-parallel world_size == 1."""

    def __init__(self, input_size, output_size, *, bias=True,
                 input_is_parallel=False, key=None):
        # TODO(synk): multi-chip tensor parallelism would shard K across chips
        # and replace the identity all-reduce with a make_async_remote_copy ring.
        world_size = 1
        self.input_size = input_size
        self.output_size = output_size
        self.input_size_per_partition = input_size // world_size
        self.input_is_parallel = input_is_parallel

        # xavier_normal_ on the PyTorch-layout (out, in) weight:
        # std = sqrt(2 / (fan_in + fan_out)).
        std = math.sqrt(2.0 / (self.input_size_per_partition + output_size))
        self.weight = std * jax.random.normal(
            key, (output_size, self.input_size_per_partition), jnp.float32)

        cfg = _select_tile_config()
        self.vmem_limit_bytes = cfg["vmem_limit_bytes"]
        self.tile_m = cfg["tile_m"]

        k_lane = _round_up(self.input_size_per_partition, 128)
        n_lane = _round_up(output_size, 128)
        self.tile_k = min(cfg["tile_k"], k_lane)

        tn = min(cfg["tile_n"], n_lane)
        # Guarantee >=2 blocks along the parallel N axis when it would collapse
        # to a single block (lets v7x shard across its 2 TensorCores; near-free
        # on single-TC v5e/v6e).
        if tn >= n_lane and n_lane >= 256:
            tn = max(128, (n_lane // 2) // 128 * 128)
        self.tile_n = tn

        self.k_pad = _round_up(self.input_size_per_partition, self.tile_k)
        self.n_pad = _round_up(n_lane, self.tile_n)

        # Transpose + zero-pad + cast to bf16 ONCE; forward never re-pads the
        # weight (avoids a full extra HBM copy of K x N every call).
        w_t = jnp.transpose(self.weight)                      # (in, out)
        w_t = jnp.pad(
            w_t,
            ((0, self.k_pad - self.input_size_per_partition),
             (0, self.n_pad - output_size)))
        self.weight_t = w_t.astype(jnp.bfloat16)

        # Bias is zero-initialized and returned (NOT added) by forward, matching
        # the reference module's (output, output_bias) contract.
        self.bias = jnp.zeros((output_size,), jnp.float32) if bias else None

    def forward(self, input_):
        """input_: [sequence, batch, hidden] -> (output, output_bias)."""
        # world_size == 1: scatter_to_tensor_model_parallel_region and
        # reduce_from_tensor_model_parallel_region are identities.
        seq, batch, hidden = input_.shape
        x2d = input_.reshape(seq * batch, hidden)
        out2d = row_parallel_matmul(
            x2d, self.weight_t, n_out=self.output_size,
            tile_m=self.tile_m, tile_n=self.tile_n, tile_k=self.tile_k,
            vmem_limit_bytes=self.vmem_limit_bytes, out_dtype=jnp.float32)
        output = out2d.reshape(seq, batch, self.output_size)
        return output, self.bias


if __name__ == "__main__":
    key = jax.random.PRNGKey(0)
    k_w, k_x = jax.random.split(key)

    # Small shapes consistent with the module: [sequence, batch, hidden].
    seq, batch, hidden, out_features = 8, 2, 32, 48
    layer = RowParallelLinear(hidden, out_features, bias=True, key=k_w)
    x = jax.random.normal(k_x, (seq, batch, hidden), jnp.float32)

    out, out_bias = layer.forward(x)
    jax.block_until_ready((out, out_bias))

    assert out.shape == (seq, batch, out_features)

    # Reference with the same bf16-rounded operands (f32 accumulation): matches
    # the kernel's MXU numerics up to accumulation order.
    x_bf = x.reshape(seq * batch, hidden).astype(jnp.bfloat16).astype(jnp.float32)
    w_bf = layer.weight.astype(jnp.bfloat16).astype(jnp.float32)
    ref = (x_bf @ w_bf.T).reshape(seq, batch, out_features)
    assert jnp.allclose(out, ref, atol=1e-4, rtol=1e-4)

    # Loose check against the pure-f32 math (only bf16 operand rounding differs).
    ref_f32 = (x.reshape(seq * batch, hidden) @ layer.weight.T
               ).reshape(seq, batch, out_features)
    assert jnp.allclose(out, ref_f32, atol=5e-2, rtol=5e-2)

    assert out_bias is not None
    assert jnp.allclose(out_bias, jnp.zeros((out_features,), jnp.float32))

    print("KERNEL_OK")
</pallas_src>

<mosaic_0001>
module attributes {stable_mosaic.version = 11 : i64} {
  func.func @_matmul_kernel_f32_out(%arg0: i32, %arg1: i32, %arg2: i32, %arg3: memref<16x128xbf16, #tpu.memory_space<vmem>>, %arg4: memref<128x128xbf16, #tpu.memory_space<vmem>>, %arg5: memref<16x128xf32, #tpu.memory_space<vmem>>) attributes {dimension_semantics = [#tpu.dimension_semantics<parallel>, #tpu.dimension_semantics<parallel>, #tpu.dimension_semantics<arbitrary>], iteration_bounds = array<i64: 1, 1, 1>, scalar_prefetch = 0 : i64, scratch_operands = 0 : i64, tpu.core_type = #tpu.core_type<tc>, window_params = [{transform_indices = @transform_0, window_bounds = array<i64: 16, 128>}, {transform_indices = @transform_1, window_bounds = array<i64: 128, 128>}, {transform_indices = @transform_2, window_bounds = array<i64: 16, 128>}]} {
    %c0_i32 = arith.constant 0 : i32
    %0 = arith.cmpi eq, %arg2, %c0_i32 : i32
    %1 = arith.extui %0 : i1 to i32
    %c0_i32_0 = arith.constant 0 : i32
    %2 = arith.cmpi ne, %1, %c0_i32_0 : i32
    scf.if %2 {
      %cst_8 = arith.constant 0.000000e+00 : f32
      %9 = vector.broadcast %cst_8 : f32 to vector<16x128xf32>
      %c0_9 = arith.constant 0 : index
      %c0_10 = arith.constant 0 : index
      %10 = vector.load %arg5[%c0_9, %c0_10] : memref<16x128xf32, #tpu.memory_space<vmem>>, vector<16x128xf32>
      tpu.vector_store %arg5[%c0_9, %c0_10], %9 {strides = array<i32>} : memref<16x128xf32, #tpu.memory_space<vmem>>, vector<16x128xf32>,
    } else {
    }
    %c0 = arith.constant 0 : index
    %c0_1 = arith.constant 0 : index
    %3 = vector.load %arg5[%c0, %c0_1] : memref<16x128xf32, #tpu.memory_space<vmem>>, vector<16x128xf32>
    %c0_2 = arith.constant 0 : index
    %c0_3 = arith.constant 0 : index
    %4 = vector.load %arg3[%c0_2, %c0_3] : memref<16x128xbf16, #tpu.memory_space<vmem>>, vector<16x128xbf16>
    %c0_4 = arith.constant 0 : index
    %c0_5 = arith.constant 0 : index
    %5 = vector.load %arg4[%c0_4, %c0_5] : memref<128x128xbf16, #tpu.memory_space<vmem>>, vector<128x128xbf16>
    %cst = arith.constant dense<0.000000e+00> : vector<16x128xf32>
    %6 = tpu.matmul %4, %5, %cst {dimension_numbers = #tpu.dot_dimension_numbers<[1], [0], [0], [1], [0, 0, 1, 1], [], []>} : vector<16x128xbf16>, vector<128x128xbf16>, vector<16x128xf32> -> vector<16x128xf32>
    %7 = arith.addf %3, %6 : vector<16x128xf32>
    %c0_6 = arith.constant 0 : index
    %c0_7 = arith.constant 0 : index
    %8 = vector.load %arg5[%c0_6, %c0_7] : memref<16x128xf32, #tpu.memory_space<vmem>>, vector<16x128xf32>
    tpu.vector_store %arg5[%c0_6, %c0_7], %7 {strides = array<i32>} : memref<16x128xf32, #tpu.memory_space<vmem>>, vector<16x128xf32>,
    return
  }
  func.func @transform_0(%arg0: i32, %arg1: i32, %arg2: i32) -> (i32, i32) {
    %c0_i32 = arith.constant 0 : i32
    return %arg0, %arg2 : i32, i32
  }
  func.func @transform_1(%arg0: i32, %arg1: i32, %arg2: i32) -> (i32, i32) {
    %c0_i32 = arith.constant 0 : i32
    return %arg2, %arg1 : i32, i32
  }
  func.func @transform_2(%arg0: i32, %arg1: i32, %arg2: i32) -> (i32, i32) {
    %c0_i32 = arith.constant 0 : i32
    return %arg0, %arg1 : i32, i32
  }
}

</mosaic_0001>

<bundles_post_ra>
// kernel: tpu_custom_call.1
= control target key start
LH: loop header
LB: loop body
LE: loop exit
PB: predicated region body
PF: predicated region fallthrough
CT: control target
= control target key end

     0   :  { %7 = vsyncpa [#allocation3], 0  ;;  %s339_s0 = inlined_call_operand.hbm [shape: bf16[16,128], index: 0, kind: input, shape index: {}]   ;;  %s340_s1 = inlined_call_operand.hbm [shape: bf16[128,128], index: 1, kind: input, shape index: {}]   ;;  %s341_s2 = inlined_call_operand.hbm [shape: f32[16,128], index: 2, kind: output, shape index: {}]  }
   0x1   :  { %8 = vsyncpa [#allocation6], 0 }
   0x2   :  { %9 = vsyncpa [#allocation4], 0  ;;  %s306_s9 = smov [#allocation2]  }
   0x3   :  { %s15_s10 = sshll.u32 %s306_s9, 4  ;;  %s16_s10 = int_to_ptr.vmem [resolvable:$true] %s15_s10 }
   0x4   :  { %s248_s11 = scalar_lea.vmem %s16_s10, 128  ;;  %p253_p1 = scmp.lt.s32.totalorder %s16_s10, %s16_s10 }
   0x5   :  { %p249_p0 = scmp.ne.s32.totalorder %s16_s10, %s248_s11  ;;  %p254_p2 = scmp.lt.s32.totalorder %s248_s11, %s248_s11 }
   0x7   :  { %p255_p3 = por %p254_p2, %p253_p1 }
   0x9   :  { %p256_p4 = pnand %p255_p3, %p249_p0 }
   0xb   :  { %259 = shalt.err (!%p256_p4)
}
   0xc   :  { %s307_s12 = smov 64   ;;  %s308_s13 = smov 4  }
   0xd   :  { %21 = dma.hbm_to_vmem [thread:$0]  %s339_s0, 128, %s16_s10, [#allocation3], %s307_s12, %s307_s12, %s308_s13  }
   0xe   :  { %s309_s16 = smov [#allocation5]  }
   0xf   :  { %s27_s17 = sshll.u32 %s309_s16, 4  ;;  %s28_s17 = int_to_ptr.vmem [resolvable:$true] %s27_s17 }
  0x10   :  { %s268_s18 = scalar_lea.vmem %s28_s17, 1024  ;;  %p273_p6 = scmp.lt.s32.totalorder %s28_s17, %s28_s17 }
  0x11   :  { %p269_p5 = scmp.ne.s32.totalorder %s28_s17, %s268_s18  ;;  %p274_p7 = scmp.lt.s32.totalorder %s268_s18, %s268_s18 }
  0x13   :  { %p275_p8 = por %p274_p7, %p273_p6 }
  0x15   :  { %p276_p9 = pnand %p275_p8, %p269_p5 }
  0x17   :  { %279 = shalt.err (!%p276_p9)
}
  0x18   :  { %33 = dma.hbm_to_vmem [thread:$0]  %s340_s1, 1024, %s28_s17, [#allocation6], %s307_s12, %s307_s12, %s308_s13  }
  0x19   :  { %300 = dma.done.wait [#allocation3], 128  }
  0x1a   :  { %301 = vsyncadd [#allocation3], 4294967168 }
  0x1b   :  { %302 = dma.done.wait [#allocation6], 1024  }
  0x1c   :  { %303 = vsyncadd [#allocation6], 4294966272  ;;  %v310_v0 = vmov 0.0   ;;  %vm311_vm0 = vmmov 0   ;;  %v231_v1 = vld [vmem:[#allocation5 + $0x38] sm:$0xff]   ;;  %v232_v2 = vld [vmem:[#allocation5 + $0x30] sm:$0xff]  }
  0x1d   :  { %202 = vmatprep.subr.bf16.mxu0 %v310_v0  ;;  %218 = vmatprep.mubr.msk.bf16.mxu0 %vm311_vm0, %v310_v0  ;;  %v233_v3 = vld [vmem:[#allocation5 + $0x28] sm:$0xff]   ;;  %v234_v4 = vld [vmem:[#allocation5 + $0x20] sm:$0xff]   ;;  %v235_v5 = vld [vmem:[#allocation5 + $0x18] sm:$0xff]   ;;  %s312_s0 = smov [#allocation7]  }
  0x1e   :  { %203 = vmatpush3.bf16.msra.mxu0 %v231_v1  ;;  %v236_v6 = vld [vmem:[#allocation5 + $0x10] sm:$0xff]   ;;  %v237_v7 = vld [vmem:[#allocation5 + $0x8] sm:$0xff]   ;;  %v238_v8 = vld [vmem:[#allocation5] sm:$0xff]   ;;  %s171_s1 = sshll.u32 %s312_s0, 4  ;;  %s172_s1 = int_to_ptr.vmem [resolvable:$true] %s171_s1 }
  0x1f   :  { %204 = vmatprep.subr.bf16.mxu0 %v310_v0  ;;  %v239_v9 = vld [vmem:[#allocation2] sm:$0xff]   ;;  %s280_s21 = scalar_lea.vmem %s172_s1, 256  ;;  %p285_p11 = scmp.lt.s32.totalorder %s172_s1, %s172_s1 }
  0x20   :  { %p281_p10 = scmp.ne.s32.totalorder %s172_s1, %s280_s21  ;;  %p286_p12 = scmp.lt.s32.totalorder %s280_s21, %s280_s21 }
  0x22   :  { %205 = vmatpush3.bf16.msra.mxu0 %v232_v2  ;;  %p287_p13 = por %p286_p12, %p285_p11 }
  0x23   :  { %206 = vmatprep.subr.bf16.mxu0 %v310_v0 }
  0x24   :  { %p288_p0 = pnand %p287_p13, %p281_p10 }
  0x26   :  { %207 = vmatpush3.bf16.msra.mxu0 %v233_v3 }
  0x27   :  { %208 = vmatprep.subr.bf16.mxu0 %v310_v0 }
  0x2a   :  { %209 = vmatpush3.bf16.msra.mxu0 %v234_v4 }
  0x2b   :  { %210 = vmatprep.subr.bf16.mxu0 %v310_v0 }
  0x2e   :  { %211 = vmatpush3.bf16.msra.mxu0 %v235_v5 }
  0x2f   :  { %212 = vmatprep.subr.bf16.mxu0 %v310_v0 }
  0x32   :  { %213 = vmatpush3.bf16.msra.mxu0 %v236_v6 }
  0x33   :  { %214 = vmatprep.subr.bf16.mxu0 %v310_v0 }
  0x36   :  { %215 = vmatpush3.bf16.msra.mxu0 %v237_v7 }
  0x37   :  { %216 = vmatprep.subr.bf16.mxu0 %v310_v0 }
  0x3a   :  { %217 = vmatpush3.bf16.msra.mxu0 %v238_v8 }
  0x3d   :  { %219 = vmatmul.mubr.bf16.vlgmr.msra.gmra.mxu0 %v239_v9 }
  0xfd   :  { %v155_v10 = vpop.f32.mrf.mxu0 }
  0xfe   :  { %164 = vst [vmem:[#allocation7] sm:$0xff] %v155_v10 }
  0xff   :  { %v220_v11 = vpop.f32.mrf.mxu0 }
 0x101   :  { %v158_v12 = vpop.f32.mrf.mxu0 }
 0x102   :  { %165 = vst [vmem:[#allocation7 + $0x8] sm:$0xff] %v158_v12 }
 0x103   :  { %v221_v13 = vpop.f32.mrf.mxu0 }
 0x104   :  { %291 = shalt.err (!%p288_p0)
}
 0x105   :  { %s313_s22 = smov 128   ;;  %s314_s23 = smov 8  }
 0x106   :  { %177 = dma.vmem_to_hbm [thread:$0]  %s172_s1, 256, %s341_s2, [#allocation4], %s313_s22, %s313_s22, %s314_s23  }
 0x107   :  { %304 = dma.done.wait [#allocation4], 256  }
 0x108   :  { %305 = vsyncadd [#allocation4], 4294967040 }
 0x109   :  { %181 = vsyncpa [#allocation3], 1 }
 0x10a   :  { %182 = vsyncpa [#allocation6], 1 }
 0x10b   :  { %183 = vsyncpa [#allocation4], 1 }

</bundles_post_ra>
